<compile_context>
chip_gen: v7x
topology: tpu7x:2x2x1
jax: 0.10.0
libtpu: 0.0.40
codegen_flags: <defaults>
</compile_context>

<pallas_src>
import numpy as np
import jax
import jax.numpy as jnp
from jax.experimental import pallas as pl
from jax.experimental.pallas import tpu as pltpu


def _round_up(x, m):
    return ((x + m - 1) // m) * m


def _next_pow2(x):
    return 1 << (max(int(x), 1) - 1).bit_length()


# --------------------------------------------------------------------------
# Kernels
# --------------------------------------------------------------------------
def _mean_agg_kernel_single_k(mask_ref, emb_ref, invdeg_ref, out_ref):
    # mask: (TM, Up), emb: (Up, TN), invdeg: (TM, 1) f32, out: (TM, TN) f32
    out_ref[...] = (
        jnp.dot(mask_ref[...], emb_ref[...], preferred_element_type=jnp.float32)
        * invdeg_ref[...]
    ).astype(out_ref.dtype)


def _mean_agg_kernel_multi_k(nnz_ref, mask_ref, emb_ref, invdeg_ref, out_ref,
                             acc_ref):
    # nnz_ref: (Mtiles, Ktiles) int32 in SMEM (scalar-prefetched)
    # mask: (TM, TK), emb: (TK, TN), invdeg: (TM, 1) f32
    # out: (TM, TN) f32, acc: (TM, TN) f32 VMEM scratch
    i = pl.program_id(0)
    k = pl.program_id(2)

    @pl.when(k == 0)
    def _():
        acc_ref[...] = jnp.zeros_like(acc_ref)

    # Skip MXU + accumulate work on all-zero mask tiles (>99% sparse mask).
    @pl.when(nnz_ref[i, k] != 0)
    def _():
        acc_ref[...] += jnp.dot(mask_ref[...], emb_ref[...],
                                preferred_element_type=jnp.float32)

    @pl.when(k == pl.num_programs(2) - 1)
    def _():
        # exact host-side 1/deg; broadcast multiply at finalize only
        out_ref[...] = (acc_ref[...] * invdeg_ref[...]).astype(out_ref.dtype)


# --------------------------------------------------------------------------
# pallas_call wrapper
# --------------------------------------------------------------------------
_VMEM_LIMIT = 48 * 1024 * 1024  # <= v7x 64 MiB ceiling, plenty on v5e/v6e


def mean_aggregate_pallas(mask, emb, inv_deg, tile_nnz, *, tm, tn, tk):
    """mask: (Np,Up), emb: (Up,Dp), inv_deg: (Np,1) f32 -> (Np,Dp) f32."""
    Np, Up = mask.shape
    Up2, Dp = emb.shape
    assert Up == Up2
    assert Np % tm == 0 and Up % tk == 0 and Dp % tn == 0

    n_m, n_n, n_k = Np // tm, Dp // tn, Up // tk

    if n_k == 1:
        # Single-K fast path: no accumulator scratch, no nnz prefetch.
        return pl.pallas_call(
            _mean_agg_kernel_single_k,
            out_shape=jax.ShapeDtypeStruct((Np, Dp), jnp.float32),
            grid_spec=pltpu.PrefetchScalarGridSpec(
                num_scalar_prefetch=0,
                grid=(n_m, n_n),
                in_specs=[
                    pl.BlockSpec((tm, tk), lambda i, j: (i, 0)),
                    pl.BlockSpec((tk, tn), lambda i, j: (0, j)),
                    pl.BlockSpec((tm, 1), lambda i, j: (i, 0)),
                ],
                out_specs=pl.BlockSpec((tm, tn), lambda i, j: (i, j)),
            ),
            compiler_params=pltpu.CompilerParams(
                dimension_semantics=("parallel", "parallel"),
                vmem_limit_bytes=_VMEM_LIMIT,
            ),
        )(mask, emb, inv_deg)

    return pl.pallas_call(
        _mean_agg_kernel_multi_k,
        out_shape=jax.ShapeDtypeStruct((Np, Dp), jnp.float32),
        grid_spec=pltpu.PrefetchScalarGridSpec(
            num_scalar_prefetch=1,  # tile_nnz -> SMEM, positional in index_maps
            grid=(n_m, n_n, n_k),
            in_specs=[
                pl.BlockSpec((tm, tk), lambda i, j, k, nnz: (i, k)),
                pl.BlockSpec((tk, tn), lambda i, j, k, nnz: (k, j)),
                pl.BlockSpec((tm, 1), lambda i, j, k, nnz: (i, 0)),
            ],
            out_specs=pl.BlockSpec((tm, tn), lambda i, j, k, nnz: (i, j)),
            scratch_shapes=[pltpu.VMEM((tm, tn), jnp.float32)],
        ),
        compiler_params=pltpu.CompilerParams(
            dimension_semantics=("parallel", "parallel", "arbitrary"),
            vmem_limit_bytes=_VMEM_LIMIT,
        ),
    )(tile_nnz, mask, emb, inv_deg)


# --------------------------------------------------------------------------
# Host-side module (mirrors the PyTorch MeanAggregator forward semantics)
# --------------------------------------------------------------------------
def exclusive_combine(samp_neighs):
    """Union of all node ids, preserving first-appearance order."""
    seen = set()
    out = []
    for neigh in samp_neighs:
        for n in neigh:
            if n not in seen:
                seen.add(n)
                out.append(n)
    return out


class MeanAggregator:
    """JAX/Pallas port of the PyTorch MeanAggregator (same forward math)."""

    TM_MAX = 512
    TK_MAX = 4096

    def __init__(self, embedding_table, gcn=True, use_bf16=True):
        # `features` in the original module is an embedding lookup table.
        self.gcn = gcn  # stored (unused in forward, matching the original)
        table = jnp.asarray(embedding_table, jnp.float32)
        self.feat_dim = int(table.shape[1])
        d128 = _round_up(max(self.feat_dim, 128), 128)
        self.dp = d128
        self.tn = 256 if d128 % 256 == 0 else 128
        if d128 != self.feat_dim:
            table = jnp.pad(table, ((0, 0), (0, d128 - self.feat_dim)))
        # Default: bf16 operands (mask 0/1 exact; embeddings rounded to bf16,
        # ~0.4% rel. difference vs. the f32 PyTorch module), f32 accumulation.
        # Pass use_bf16=False to keep the original f32 operand numerics.
        self.op_dtype = jnp.bfloat16 if use_bf16 else jnp.float32
        self.embedding_table = table.astype(self.op_dtype)

    def forward(self, nodes, to_neighs):
        # --- host-side graph bookkeeping (identical to the PyTorch module) ---
        samp_neighs = [list(sn) + [nodes[i]] for i, sn in enumerate(to_neighs)]
        unique_nodes_list = exclusive_combine(samp_neighs)
        unique_nodes = {n: i for i, n in enumerate(unique_nodes_list)}

        N = len(samp_neighs)
        U = len(unique_nodes_list)

        # Bucketed (power-of-two) padded sizes -> compile-cache friendly.
        Np = _next_pow2(max(N, 32))
        tm = min(self.TM_MAX, Np // 2)          # >=2 M-tiles: both v7x TCs busy
        Up = _next_pow2(max(U, 128))
        tk = min(self.TK_MAX, Up)

        # 0/1 mask built directly in the kernel operand dtype (bf16 is exact
        # for 0/1) at its final padded shape: no f32 detour, half the H2D bytes.
        mask_np = np.zeros((Np, Up), dtype=self.op_dtype)
        col = np.asarray([unique_nodes[n] for sn in samp_neighs for n in sn],
                         dtype=np.int64)
        row = np.asarray([i for i, sn in enumerate(samp_neighs) for _ in sn],
                         dtype=np.int64)
        mask_np[row, col] = 1

        # exact inverse degree == 1 / mask.sum(1) (unique entries per row)
        inv_deg_np = np.zeros((Np, 1), dtype=np.float32)
        inv_deg_np[:N, 0] = [1.0 / len(set(sn)) for sn in samp_neighs]

        # gather unique embedding rows (XLA gather, like self.features(...));
        # padded indices hit row 0 but their mask columns are zero.
        idx_np = np.zeros((Up,), dtype=np.int32)
        idx_np[:U] = unique_nodes_list
        emb = jnp.take(self.embedding_table, jnp.asarray(idx_np), axis=0)

        # per-(m-tile, k-tile) nonzero counts for the zero-tile skip
        n_k = Up // tk
        tile_nnz_np = np.zeros((Np // tm, max(n_k, 1)), dtype=np.int32)
        if n_k > 1:
            np.add.at(tile_nnz_np, (row // tm, col // tk), 1)

        out = mean_aggregate_pallas(
            jnp.asarray(mask_np), emb, jnp.asarray(inv_deg_np),
            jnp.asarray(tile_nnz_np), tm=tm, tn=self.tn, tk=tk)
        return out[:N, :self.feat_dim]


# --------------------------------------------------------------------------
# Reference + tests
# --------------------------------------------------------------------------
def _reference(agg, nodes, to_neighs):
    """Pure numpy reference of the same math (against agg's stored table)."""
    samp = [list(sn) + [nodes[i]] for i, sn in enumerate(to_neighs)]
    uniq = exclusive_combine(samp)
    uidx = {n: i for i, n in enumerate(uniq)}
    m = np.zeros((len(samp), len(uniq)), dtype=np.float32)
    for i, sn in enumerate(samp):
        for n in sn:
            m[i, uidx[n]] = 1.0
    deg = m.sum(axis=1, keepdims=True)
    table_f32 = np.asarray(
        agg.embedding_table[:, :agg.feat_dim].astype(jnp.float32))
    emb = table_f32[np.asarray(uniq, dtype=np.int64)]
    return (m @ emb) / deg


if __name__ == "__main__":
    key = jax.random.PRNGKey(0)
    k1, k2 = jax.random.split(key)

    # --- test 1: tiny graph, single-K fast path, bf16 operands ---
    table1 = jax.random.normal(k1, (20, 32), dtype=jnp.float32)
    nodes1 = [0, 1, 2, 3, 4, 5, 6, 7]
    to_neighs1 = [
        [1, 2, 3], [0, 4], [5, 6, 7, 8], [9],
        [10, 11], [12, 13, 14], [15], [16, 17, 18, 19],
    ]
    agg1 = MeanAggregator(table1, gcn=True)
    out1 = jax.block_until_ready(agg1.forward(nodes1, to_neighs1))
    np.testing.assert_allclose(np.asarray(out1),
                               _reference(agg1, nodes1, to_neighs1),
                               rtol=1e-4, atol=1e-5)

    # --- test 2: larger graph, forced multi-K path (nnz-skip + accumulator) ---
    table2 = jax.random.normal(k2, (2000, 64), dtype=jnp.float32)
    rng = np.random.default_rng(0)
    nodes2 = list(range(300))
    to_neighs2 = [list(rng.choice(2000, size=12, replace=False))
                  for _ in range(300)]
    agg2 = MeanAggregator(table2, gcn=True)
    agg2.TK_MAX = 256  # shrink K tile so the multi-K kernel path is exercised
    out2 = jax.block_until_ready(agg2.forward(nodes2, to_neighs2))
    np.testing.assert_allclose(np.asarray(out2),
                               _reference(agg2, nodes2, to_neighs2),
                               rtol=1e-4, atol=1e-5)

    # --- test 3: f32-table option (documents/exercises the non-bf16 path).
    # Tolerance is loose because the MXU may still use bf16 passes for f32
    # operands at default dot precision.
    agg3 = MeanAggregator(table1, gcn=True, use_bf16=False)
    out3 = jax.block_until_ready(agg3.forward(nodes1, to_neighs1))
    np.testing.assert_allclose(np.asarray(out3),
                               _reference(agg3, nodes1, to_neighs1),
                               rtol=2e-2, atol=2e-3)

    print("KERNEL_OK")
</pallas_src>

<mosaic_0001>
module attributes {stable_mosaic.version = 11 : i64} {
  func.func @_mean_agg_kernel_single_k(%arg0: i32, %arg1: i32, %arg2: memref<16x128xbf16, #tpu.memory_space<vmem>>, %arg3: memref<128x128xbf16, #tpu.memory_space<vmem>>, %arg4: memref<16x1xf32, #tpu.memory_space<vmem>>, %arg5: memref<16x128xf32, #tpu.memory_space<vmem>>) attributes {dimension_semantics = [#tpu.dimension_semantics<parallel>, #tpu.dimension_semantics<parallel>], iteration_bounds = array<i64: 2, 1>, scalar_prefetch = 0 : i64, scratch_operands = 0 : i64, tpu.core_type = #tpu.core_type<tc>, window_params = [{transform_indices = @transform_0, window_bounds = array<i64: 16, 128>}, {transform_indices = @transform_1, window_bounds = array<i64: 128, 128>}, {transform_indices = @transform_2, window_bounds = array<i64: 16, 1>}, {transform_indices = @transform_3, window_bounds = array<i64: 16, 128>}]} {
    %c0 = arith.constant 0 : index
    %c0_0 = arith.constant 0 : index
    %0 = vector.load %arg2[%c0, %c0_0] : memref<16x128xbf16, #tpu.memory_space<vmem>>, vector<16x128xbf16>
    %c0_1 = arith.constant 0 : index
    %c0_2 = arith.constant 0 : index
    %1 = vector.load %arg3[%c0_1, %c0_2] : memref<128x128xbf16, #tpu.memory_space<vmem>>, vector<128x128xbf16>
    %cst = arith.constant dense<0.000000e+00> : vector<16x128xf32>
    %2 = tpu.matmul %0, %1, %cst {dimension_numbers = #tpu.dot_dimension_numbers<[1], [0], [0], [1], [0, 0, 1, 1], [], []>} : vector<16x128xbf16>, vector<128x128xbf16>, vector<16x128xf32> -> vector<16x128xf32>
    %c0_3 = arith.constant 0 : index
    %c0_4 = arith.constant 0 : index
    %3 = vector.load %arg4[%c0_3, %c0_4] : memref<16x1xf32, #tpu.memory_space<vmem>>, vector<16x1xf32>
    %4 = vector.broadcast %3 : vector<16x1xf32> to vector<16x128xf32>
    %5 = arith.mulf %2, %4 : vector<16x128xf32>
    %c0_5 = arith.constant 0 : index
    %c0_6 = arith.constant 0 : index
    %6 = vector.load %arg5[%c0_5, %c0_6] : memref<16x128xf32, #tpu.memory_space<vmem>>, vector<16x128xf32>
    tpu.vector_store %arg5[%c0_5, %c0_6], %5 {strides = array<i32>} : memref<16x128xf32, #tpu.memory_space<vmem>>, vector<16x128xf32>,
    return
  }
  func.func @transform_0(%arg0: i32, %arg1: i32) -> (i32, i32) {
    %c0_i32 = arith.constant 0 : i32
    %c0_i32_0 = arith.constant 0 : i32
    return %arg0, %c0_i32 : i32, i32
  }
  func.func @transform_1(%arg0: i32, %arg1: i32) -> (i32, i32) {
    %c0_i32 = arith.constant 0 : i32
    %c0_i32_0 = arith.constant 0 : i32
    return %c0_i32, %arg1 : i32, i32
  }
  func.func @transform_2(%arg0: i32, %arg1: i32) -> (i32, i32) {
    %c0_i32 = arith.constant 0 : i32
    %c0_i32_0 = arith.constant 0 : i32
    return %arg0, %c0_i32 : i32, i32
  }
  func.func @transform_3(%arg0: i32, %arg1: i32) -> (i32, i32) {
    %c0_i32 = arith.constant 0 : i32
    return %arg0, %arg1 : i32, i32
  }
}

</mosaic_0001>

<bundles_post_ra>
// kernel: tpu_custom_call.1
= control target key start
LH: loop header
LB: loop body
LE: loop exit
PB: predicated region body
PF: predicated region fallthrough
CT: control target
= control target key end

     0   :  { %8 = vsyncpa [#allocation3], 0  ;;  %s908_s0 = inlined_call_operand.vmem [shape: bf16[32,128], index: 0, kind: input, shape index: {}]   ;;  %s909_s1 = inlined_call_operand.hbm [shape: bf16[128,128], index: 1, kind: input, shape index: {}]   ;;  %s910_s2 = inlined_call_operand.vmem [shape: f32[32,1], index: 2, kind: input, shape index: {}]   ;;  %s911_s3 = inlined_call_operand.hbm [shape: f32[32,128], index: 3, kind: output, shape index: {}]  }
   0x1   :  { %9 = vsyncpa [#allocation4], 0 }
   0x2   :  { %11 = vsyncpa [#allocation4 + $0x1], 0  ;;  %s753_s12 = smov 0   ;;  %s755_s13 = smov 0  }
   0x3   :  { %s757_s14 = smov 0   ;;  %s759_s15 = smov 0  }
   0x4   :  { %s761_s16 = smov 0   ;;  %s763_s17 = smov 0  }
   0x5 LB: > { %s473_s18 = sadd.s32 4294967295, %s722_s17   ;;  %s474_s19 = sadd.s32 4294967294, %s722_s17   ;;  %s722_s17 = sphi %s763_s17, %s17_s17   ;;  %s718_s16 = sphi %s761_s16, %s929_s16   ;;  %s714_s15 = sphi %s759_s15, %s928_s15   ;;  %s710_s14 = sphi %s757_s14, %s927_s14   ;;  %s706_s13 = sphi %s755_s13, %s926_s13   ;;  %s702_s12 = sphi %s753_s12, %s925_s12  }
   0x6   : > { %s29_s20 = sadd.s32 1, %s718_s16  ;;  %s116_s21 = sadd.s32 1, %s710_s14 }
   0x7   : > { %p31_p0 = scmp.ge.s32.totalorder %s29_s20, 2  ;;  %p126_p1 = scmp.ne.s32.totalorder %s710_s14, %s706_s13 }
   0x8   : > { %p127_p2 = scmp.eq.s32.totalorder %s473_s18, 1  ;;  %p132_p3 = scmp.ne.s32.totalorder %s706_s13, %s702_s12 }
   0x9   : > { %s931_s20 = smov (%p31_p0, %s29_s20), 0  ;;  %p133_p5 = scmp.eq.s32.totalorder %s474_s19, 1 }
   0xa   : > { %p793_p4 = por %p127_p2, %p126_p1  ;;  %s111_s23 = ssub.s32 %s718_s16, %s931_s20 }
   0xb   : > { %p475_p6 = scmp.ge.s32.totalorder %s722_s17, 1  ;;  %p114_p7 = scmp.eq.s32.totalorder %s111_s23, 0 }
   0xc   : > { %s916_s22 = scalar_select %p793_p4, 1, 0 }
   0xd   : > { %p800_p8 = por %p133_p5, %p132_p3  ;;  %p140_p9 = scmp.lt.s32.totalorder %s722_s17, 3 }
   0xe   : > { %s806_s25 = scalar_select %p114_p7, %s710_s14, %s116_s21  }
   0xf   : > { %s917_s24 = scalar_select %p800_p8, 1, 0 }
  0x10   : > { %p808_p10 = pnand %p475_p6, %p140_p9  ;;  %p812_p11 = scmp.eq.s32.totalorder %s473_s18, 0 }
  0x11   : > { %s724_s28 = smov [#allocation2]   ;;  %s612_s6 = scalar_lea.hbm %s909_s1, 1024 }
  0x12   : > { %s918_s26 = scalar_select %p808_p10, 1, 0 }
  0x13   : > { %s919_s27 = scalar_select %p812_p11, 1, 0 }
  0x14   : > { %p535_p12 = pneg %p808_p10  ;;  %s154_s29 = sshll.u32 %s724_s28, 4  ;;  %s155_s29 = int_to_ptr.vmem [resolvable:$true] %s154_s29 }
  0x15   : > { %p613_p0 = scmp.ne.s32.totalorder %s909_s1, %s612_s6  ;;  %p619_p5 = scmp.lt.u32.totalorder %s612_s6, %s909_s1 }
  0x16   : > { %p820_p13 = pnand %p812_p11, %p535_p12 }
  0x18   : > { %p614_p1 = pneg %p820_p13 }
  0x1a   : > { %p615_p2 = pnand %p614_p1, %p613_p0 }
  0x1c   : > { %p616_p3 = pneg %p615_p2 }
  0x1e   : > { %p621_p6 = pnand %p619_p5, %p616_p3 }
  0x20   : > { %624 = shalt.err (!%p621_p6)
}
  0x21   : > { %s625_s11 = scalar_lea.vmem %s155_s29, 1024  ;;  %p633_p8 = scmp.lt.s32.totalorder %s155_s29, %s155_s29 }
  0x22   : > { %p626_p7 = scmp.ne.s32.totalorder %s155_s29, %s625_s11  ;;  %p634_p4 = scmp.lt.s32.totalorder %s625_s11, %s625_s11 }
  0x24   : > { %p628_p9 = pnand %p626_p7, %p614_p1  ;;  %p635_p11 = por %p634_p4, %p633_p8 }
  0x26   : > { %p629_p12 = pneg %p628_p9 }
  0x28   : > { %p636_p10 = pnand %p635_p11, %p629_p12 }
  0x2a   : > { %639 = shalt.err (!%p636_p10)
}
  0x2b   : > { %s725_s18 = smov 64   ;;  %s726_s19 = smov 4  }
  0x2c   : > { %538 = dma.hbm_to_vmem [thread:$0]  (!%p820_p13), %s909_s1, 1024, %s155_s29, [#allocation3], %s725_s18, %s725_s18, %s726_s19  }
  0x2d   : > { %p921_p0 = scmp.ne.s32.totalorder %s918_s26, 0 }
  0x2e   : > { %p922_p2 = scmp.ne.s32.totalorder (!%p921_p0), %s919_s27, 0 }
  0x2f   : > { %188 = sbr.rel (%p921_p0) target bundleno = 319 (0x13f), region = 32 }
  0x36   : > { %693 = dma.done.wait (%p922_p2), [#allocation3], 1024  }
  0x37   : > { %695 = vsyncadd (%p922_p2), [#allocation3], 4294966272  ;;  %s481_s28 = sshll.u32 %s714_s15, 1  ;;  %v727_v0 = vmov 0.0   ;;  %vm728_vm0 = vmmov 0   ;;  %v729_v1 = vmov 0  }
  0x38   : > { %509 = vmatprep.subr.bf16.mxu0 %v727_v0  ;;  %525 = vmatprep.mubr.msk.bf16.mxu0 %vm728_vm0, %v727_v0  ;;  %p218_p4 = scmp.lt.s32.totalorder %s481_s28, 3  ;;  %v603_v2 = vld [vmem:[#allocation2] sm:$0xff]   ;;  %v604_v3 = vld [vmem:[#allocation2 + $0x8] sm:$0xff]   ;;  %v605_v4 = vld [vmem:[#allocation2 + $0x10] sm:$0xff]   ;;  %s214_s8 = sand.u32 1, %s706_s13  }
  0x39   : > { %602 = vset.pattern.permute.xlu0 %v729_v1  ;;  %510 = vmatpush3.bf16.msra.mxu0 %v603_v2  ;;  %v606_v6 = vld [vmem:[#allocation2 + $0x18] sm:$0xff]   ;;  %v607_v8 = vld [vmem:[#allocation2 + $0x20] sm:$0xff]   ;;  %v608_v9 = vld [vmem:[#allocation2 + $0x28] sm:$0xff]   ;;  %s480_s9 = sshll.u32 %s214_s8, 4  ;;  %s499_s18 = sshll.u32 %s714_s15, 8 }
  0x3a   : > { %s933_s28 = smov (!%p218_p4, %s481_s28), 3  ;;  %511 = vmatprep.subr.bf16.mxu0 %v727_v0  ;;  %v609_v10 = vld [vmem:[#allocation2 + $0x30] sm:$0xff]   ;;  %v610_v11 = vld [vmem:[#allocation2 + $0x38] sm:$0xff]   ;;  %s216_s10 = scalar_lea.vmem [#allocation5], %s480_s9 }
  0x3b   : > { %s484_s26 = sshll.u32 %s933_s28, 3  ;;  %s482_s29 = sshll.u32 %s933_s28, 2 }
  0x3c   : > { %s227_s4 = scalar_lea.vmem %s910_s2, %s484_s26  ;;  %s221_s7 = scalar_lea.vmem %s908_s0, %s482_s29 }
  0x3d   : > { %512 = vmatpush3.bf16.msra.mxu0 %v604_v3  ;;  %v344_v5 = vld [vmem:[%s227_s4] sm:$0xff]  ;;  %v345_v7 = vld [vmem:[%s227_s4 + $0x8] sm:$0xff]  ;;  %s375_s11 = sshll.u32 %s216_s10, 4  ;;  %s860_s23 = scalar_lea.hbm %s911_s3, %s499_s18  ;;  %s855_s11 = int_to_ptr.vmem [resolvable:$true] %s375_s11 }
  0x3e   : > { %513 = vmatprep.subr.bf16.mxu0 %v727_v0  ;;  %348 = vperm.xlu0 %602, %v344_v5   ;;  %v611_v12 = vld [vmem:[%s221_s7] sm:$0xff]   ;;  %s862_s15 = scalar_lea.sflag [#allocation4], %s214_s8  ;;  %s640_s28 = scalar_lea.vmem %s855_s11, 256 }
  0x3f   : > { %p641_p8 = scmp.ne.s32.totalorder %s855_s11, %s640_s28  ;;  %p923_p10 = scmp.ne.s32.totalorder %s916_s22, 0 }
  0x40   : > { %s730_s26 = smov [#allocation5]  }
  0x41   : > { %514 = vmatpush3.bf16.msra.mxu0 %v605_v4  ;;  %p642_p11 = pnand %p641_p8, %p923_p10  ;;  %s644_s29 = sshll.u32 %s730_s26, 4  ;;  %s645_s29 = int_to_ptr.vmem [resolvable:$false] %s644_s29 }
  0x42   : > { %515 = vmatprep.subr.bf16.mxu0 %v727_v0  ;;  %353 = vperm.xlu0 %602, %v345_v7   ;;  %s646_s27 = scalar_lea.vmem %s645_s29, 512  ;;  %p647_p1 = scmp.lt.s32.totalorder %s855_s11, %s645_s29 }
  0x43   : > { %p643_p13 = pneg %p642_p11  ;;  %p648_p3 = scmp.lt.s32.totalorder %s646_s27, %s640_s28 }
  0x45   : > { %516 = vmatpush3.bf16.msra.mxu0 %v606_v6  ;;  %p649_p5 = por %p648_p3, %p647_p1 }
  0x46   : > { %517 = vmatprep.subr.bf16.mxu0 %v727_v0 }
  0x47   : > { %p650_p6 = pnand %p649_p5, %p643_p13 }
  0x49   : > { %518 = vmatpush3.bf16.msra.mxu0 %v607_v8 }
  0x4a   : > { %519 = vmatprep.subr.bf16.mxu0 %v727_v0 }
  0x4d   : > { %520 = vmatpush3.bf16.msra.mxu0 %v608_v9 }
  0x4e   : > { %521 = vmatprep.subr.bf16.mxu0 %v727_v0 }
  0x51   : > { %522 = vmatpush3.bf16.msra.mxu0 %v609_v10 }
  0x52   : > { %523 = vmatprep.subr.bf16.mxu0 %v727_v0 }
  0x55   : > { %524 = vmatpush3.bf16.msra.mxu0 %v610_v11 }
  0x58   : > { %526 = vmatmul.mubr.bf16.vlgmr.msra.gmra.mrb[0].mxu0 %v611_v12 }
  0xbd   : > { %v349_v13 = vpop.permute.xlu0 %348 }
  0xc1   : > { %v354_v17 = vpop.permute.xlu0 %353 }
 0x12b   : > { %v337_v14 = vpop.f32.mrb[0].mxu0 }
 0x12c   : > { %v356_v15 = vmul.f32 %v349_v13, %v337_v14  ;;  %v527_v16 = vpop.f32.mrb[1].mxu0 }
 0x12d   : > { %v340_v18 = vpop.f32.mrb[2].mxu0 }
 0x12e   : > { %358 = vst [vmem:[%s216_s10] sm:$0xff] %v356_v15  ;;  %v357_v19 = vmul.f32 %v354_v17, %v340_v18  ;;  %v528_v20 = vpop.f32.mrb[3].mxu0 }
 0x130   : > { %359 = vst [vmem:[%s216_s10 + $0x8] sm:$0xff] %v357_v19 }
 0x131   : > { %653 = shalt.err (!%p650_p6)
}
 0x132   : > { %s654_s30 = scalar_lea.hbm %s860_s23, 256  ;;  %s658_s6 = scalar_lea.hbm %s911_s3, 512 }
 0x133   : > { %p655_p7 = scmp.ne.s32.totalorder %s860_s23, %s654_s30  ;;  %p659_p0 = scmp.lt.u32.totalorder %s860_s23, %s911_s3 }
 0x134   : > { %p660_p2 = scmp.lt.u32.totalorder %s658_s6, %s654_s30  ;;  %p662_p8 = scmp.lt.u32.totalorder %s654_s30, %s860_s23 }
 0x135   : > { %p656_p9 = pnand %p655_p7, %p923_p10 }
 0x136   : > { %p661_p4 = por %p660_p2, %p659_p0 }
 0x137   : > { %p657_p12 = pneg %p656_p9 }
 0x138   : > { %p663_p11 = por %p662_p8, %p661_p4 }
 0x13a   : > { %p664_p13 = pnand %p663_p11, %p657_p12 }
 0x13c   : > { %667 = shalt.err (!%p664_p13)
}
 0x13d   : > { %s731_s9 = smov 128   ;;  %s732_s10 = smov 8  }
 0x13e   : > { %533 = dma.vmem_to_hbm [thread:$0]  (%p923_p10), %s855_s11, 256, %s860_s23, %s862_s15, %s731_s9, %s731_s9, %s732_s10  }
 0x13f PF: > { %p545_p1 = scmp.ge.s32.totalorder %s722_s17, 2  ;;  %s390_s18 = sand.u32 1, %s702_s12  }
 0x140   : > { %p924_p3 = scmp.ne.s32.totalorder %s917_s24, 0  ;;  %s391_s19 = scalar_lea.sflag [#allocation4], %s390_s18 }
 0x142   : > { %p540_p5 = pnand %p545_p1, %p924_p3 }
 0x144   : > { %697 = dma.done.wait (!%p540_p5), %s391_s19, 256  }
 0x145   : > { %699 = vsyncadd (!%p540_p5), %s391_s19, 4294967040  ;;  %s17_s17 = sadd.s32 1, %s722_s17   ;;  %s925_s12 = smov %s706_s13 }
 0x146   : > { %p14_p6 = scmp.ge.s32.totalorder %s17_s17, 4   ;;  %s926_s13 = smov %s710_s14 }
 0x147   : > { %s927_s14 = smov %s806_s25  ;;  %s928_s15 = smov %s718_s16 }
 0x148   : > { %s929_s16 = smov %s931_s20  ;;  %16 = sbr.rel (!%p14_p6) target bundleno = 5 (0x5), region = 76 }
 0x14f   :  { %396 = vsyncpa [#allocation3], 1 }
 0x150   :  { %398 = vsyncpa [#allocation3 + $0x1], 1 }
 0x151   :  { %399 = vsyncpa [#allocation4], 1 }
 0x152   :  { %401 = vsyncpa [#allocation4 + $0x1], 1 }

</bundles_post_ra>
